<compile_context>
chip_gen: v7x
topology: tpu7x:2x2x1
jax: 0.10.0
libtpu: 0.0.40
codegen_flags: <defaults>
</compile_context>

<pallas_src>
import functools

import jax
import jax.numpy as jnp
from jax import lax
from jax.experimental import pallas as pl
from jax.experimental.pallas import tpu as pltpu


def _horizontal_pass(x, up, dn, ox_ref, oy_ref):
    """Shared horizontal Sobel pass + abs + store (whole-block stores)."""
    w = x.shape[-1]
    t = up + 2.0 * x + dn                                   # [1, 2, 1]^T -> sobel-x
    d = up - dn                                             # [1, 0,-1]^T -> sobel-y

    col = lax.broadcasted_iota(jnp.int32, (1, w), 1)
    col_first = col == 0                                    # computed once, reused
    col_last = col == w - 1

    left_t = jnp.where(col_first, 0.0, pltpu.roll(t, shift=1, axis=1))
    right_t = jnp.where(col_last, 0.0, pltpu.roll(t, shift=w - 1, axis=1))
    left_d = jnp.where(col_first, 0.0, pltpu.roll(d, shift=1, axis=1))
    right_d = jnp.where(col_last, 0.0, pltpu.roll(d, shift=w - 1, axis=1))

    ox_ref[...] = jnp.abs(right_t - left_t).astype(ox_ref.dtype)          # [-1,0,1]
    oy_ref[...] = jnp.abs(left_d + 2.0 * d + right_d).astype(oy_ref.dtype)  # [1,2,1]


def _sobel_small_kernel(x_ref, rmod_ref, ox_ref, oy_ref, *, img_h):
    """Small-image path: whole batch flattened to one (N*H, W) block."""
    x = x_ref[...].astype(jnp.float32)                      # (NH, W)
    nh = x.shape[0]
    rmod = rmod_ref[...]                                    # (NH, 1) int32: row % H

    # Vertical neighbours; rows that wrap across image boundaries are exactly
    # the image top/bottom rows and get zero (conv zero padding).
    up = jnp.where(rmod == 0, 0.0, pltpu.roll(x, shift=1, axis=0))
    dn = jnp.where(rmod == img_h - 1, 0.0, pltpu.roll(x, shift=nh - 1, axis=0))

    _horizontal_pass(x, up, dn, ox_ref, oy_ref)


def _sobel_tiled_kernel(x_ref, top_ref, bot_ref, ox_ref, oy_ref, *,
                        tile_rows, img_h, halo_rows):
    """Processes one (1, TH, W) row-tile of one image (halo'd path)."""
    h = pl.program_id(1)
    last_h = pl.num_programs(1) - 1

    x = x_ref[0].astype(jnp.float32)                        # (TH, W)
    th, _ = x.shape

    # Row just above / below this tile; zeroed with (1,W) scalar-gated selects
    # at the image top / bottom (instead of full-tile selects).
    top_row = top_ref[0][halo_rows - 1:halo_rows, :].astype(jnp.float32)  # (1, W)
    bot_row = bot_ref[0][0:1, :].astype(jnp.float32)                      # (1, W)
    top_val = jnp.where(h == 0, 0.0, top_row)
    bot_val = jnp.where(h == last_h, 0.0, bot_row)

    row = lax.broadcasted_iota(jnp.int32, (th, 1), 0)       # (TH,1), not (TH,W)

    up = jnp.where(row == 0, top_val, pltpu.roll(x, shift=1, axis=0))
    dn = jnp.where(row == th - 1, bot_val, pltpu.roll(x, shift=th - 1, axis=0))

    if img_h % tile_rows != 0:
        # Ragged last tile only: the true image bottom row is interior to the
        # tile and its "row below" is OOB padding -> zero it. Emitted only when
        # statically needed.
        grow = row + h * tile_rows
        dn = jnp.where(grow == img_h - 1, 0.0, dn)

    _horizontal_pass(x, up, dn, ox_ref.at[0], oy_ref.at[0])


def sobelxy(x, *, out_dtype=None, max_tile_rows=1024,
            vmem_budget_bytes=24 * 1024 * 1024,
            small_path_max_input_bytes=128 * 1024):
    """x: (N, 1, H, W) -> (|sobel_x|, |sobel_y|), each (N, 1, H, W)."""
    N, C, H, W = x.shape
    if C != 1:
        raise ValueError("Sobelxy's (1,1,3,3) conv weights require C == 1")
    out_dtype = x.dtype if out_dtype is None else jnp.dtype(out_dtype)
    isz = x.dtype.itemsize
    osz = jnp.dtype(out_dtype).itemsize

    x3 = x.reshape(N, H, W)
    cost = pl.CostEstimate(flops=20 * N * H * W, transcendentals=0,
                           bytes_accessed=N * H * W * (isz + 2 * osz))

    # ---------------- small-image fast path ----------------
    if N * H * W * isz <= small_path_max_input_bytes:
        nh = N * H
        xf = x3.reshape(nh, W)
        # Per-row position inside its image (built outside the kernel; avoids
        # vector integer modulo inside Mosaic).
        rmod = (jnp.arange(nh, dtype=jnp.int32) % H).reshape(nh, 1)
        kernel = functools.partial(_sobel_small_kernel, img_h=H)
        ox, oy = pl.pallas_call(
            kernel,
            out_shape=(jax.ShapeDtypeStruct((nh, W), out_dtype),
                       jax.ShapeDtypeStruct((nh, W), out_dtype)),
            grid_spec=pltpu.PrefetchScalarGridSpec(
                num_scalar_prefetch=0,
                grid=(1,),
                in_specs=[pl.BlockSpec((nh, W), lambda i: (0, 0)),
                          pl.BlockSpec((nh, 1), lambda i: (0, 0))],
                out_specs=[pl.BlockSpec((nh, W), lambda i: (0, 0)),
                           pl.BlockSpec((nh, W), lambda i: (0, 0))],
            ),
            compiler_params=pltpu.CompilerParams(
                dimension_semantics=("arbitrary",)),
            cost_estimate=cost,
        )(xf, rmod)
        return ox.reshape(N, 1, H, W), oy.reshape(N, 1, H, W)

    # ---------------- tiled (halo) path ----------------
    # Budget: 2x double-buffered input + 2x2 double-buffered outputs + ~8
    # simultaneously-live full-tile f32 temporaries inside the kernel body.
    TEMP_TILES = 8
    budget = min(int(vmem_budget_bytes), 36 * 1024 * 1024)  # safe on v7x (64 MiB phys)
    bytes_per_row = W * (2 * isz + 4 * osz + TEMP_TILES * 4)
    th = max(8, (budget // bytes_per_row // 8) * 8)
    th = min(th, int(max_tile_rows))
    if th >= H:
        th = H                       # full-height tile (always a legal block)
    # v7x megacore: a single-image call should still expose >= 2 parallel steps.
    if N == 1 and th == H and H > 8:
        th = max(8, ((H // 2) // 8) * 8)

    hb = 8 if H >= 8 else H          # halo block height
    num_hb = pl.cdiv(H, hb)
    halo_stride = max(th // hb, 1)   # main-tile height measured in halo blocks
    grid = (N, pl.cdiv(H, th))

    tile_spec = pl.BlockSpec((1, th, W), lambda n, h: (n, h, 0))
    top_spec = pl.BlockSpec(
        (1, hb, W), lambda n, h: (n, jnp.maximum(h * halo_stride - 1, 0), 0))
    bot_spec = pl.BlockSpec(
        (1, hb, W), lambda n, h: (n, jnp.minimum((h + 1) * halo_stride, num_hb - 1), 0))
    out_spec = pl.BlockSpec((1, th, W), lambda n, h: (n, h, 0))

    # Explicit scoped-VMEM limit sized to the real footprint (I/O + temps),
    # with headroom, capped well under v7x's 64 MiB physical VMEM per core.
    io_bytes = 2 * th * W * (isz + 2 * osz) + 2 * 2 * hb * W * isz
    footprint = io_bytes + TEMP_TILES * th * W * 4
    vmem_limit = int(footprint * 1.4) + (2 << 20)
    vmem_limit = max(16 * 1024 * 1024, min(vmem_limit, 48 * 1024 * 1024))

    kernel = functools.partial(_sobel_tiled_kernel,
                               tile_rows=th, img_h=H, halo_rows=hb)
    ox, oy = pl.pallas_call(
        kernel,
        out_shape=(jax.ShapeDtypeStruct((N, H, W), out_dtype),
                   jax.ShapeDtypeStruct((N, H, W), out_dtype)),
        grid_spec=pltpu.PrefetchScalarGridSpec(
            num_scalar_prefetch=0,
            grid=grid,
            in_specs=[tile_spec, top_spec, bot_spec],
            out_specs=[out_spec, out_spec],
        ),
        compiler_params=pltpu.CompilerParams(
            dimension_semantics=("parallel", "parallel"),
            vmem_limit_bytes=vmem_limit),
        cost_estimate=cost,
    )(x3, x3, x3)

    return ox.reshape(N, 1, H, W), oy.reshape(N, 1, H, W)


def _sobel_ref(x):
    """Pure-JAX reference (same math as F.conv2d with padding=1)."""
    kx = jnp.array([[-1., 0., 1.], [-2., 0., 2.], [-1., 0., 1.]], jnp.float32)
    ky = jnp.array([[1., 2., 1.], [0., 0., 0.], [-1., -2., -1.]], jnp.float32)
    w = jnp.stack([kx, ky])[:, None]  # (2, 1, 3, 3)
    out = jax.lax.conv_general_dilated(
        x.astype(jnp.float32), w, (1, 1), ((1, 1), (1, 1)),
        dimension_numbers=("NCHW", "OIHW", "NCHW"))
    return jnp.abs(out[:, 0:1]), jnp.abs(out[:, 1:2])


if __name__ == "__main__":
    key = jax.random.PRNGKey(0)

    # Shape implied by the module: batch=2, channels=1 (conv weights are (1,1,3,3)).
    x = jax.random.normal(key, (2, 1, 16, 16), dtype=jnp.float32)
    ox, oy = sobelxy(x)                       # small (batch-folded, no-halo) path
    jax.block_until_ready((ox, oy))
    rx, ry = _sobel_ref(x)
    assert ox.shape == (2, 1, 16, 16) and oy.shape == (2, 1, 16, 16)
    assert jnp.allclose(ox, rx, atol=1e-5), "sobel_x mismatch (small path)"
    assert jnp.allclose(oy, ry, atol=1e-5), "sobel_y mismatch (small path)"

    # bf16 output option (bandwidth saver); f32 accumulation inside.
    oxb, oyb = sobelxy(x, out_dtype=jnp.bfloat16)
    jax.block_until_ready((oxb, oyb))
    assert oxb.dtype == jnp.bfloat16 and oyb.dtype == jnp.bfloat16
    assert jnp.allclose(oxb.astype(jnp.float32), rx, atol=0.1, rtol=0.05)
    assert jnp.allclose(oyb.astype(jnp.float32), ry, atol=0.1, rtol=0.05)

    # Tiled (halo) path: single-tile-per-image, multi-tile, ragged last tile,
    # and the N==1 two-step split for megacore.
    cases = [
        ((2, 1, 16, 16), dict(small_path_max_input_bytes=0)),
        ((1, 1, 48, 24), dict(small_path_max_input_bytes=0, max_tile_rows=16)),
        ((1, 1, 40, 24), dict(small_path_max_input_bytes=0, max_tile_rows=16)),
        ((1, 1, 64, 32), dict(small_path_max_input_bytes=0)),
    ]
    for i, (shape, kwargs) in enumerate(cases):
        xt = jax.random.normal(jax.random.PRNGKey(i + 1), shape, dtype=jnp.float32)
        oxt, oyt = sobelxy(xt, **kwargs)
        jax.block_until_ready((oxt, oyt))
        rxt, ryt = _sobel_ref(xt)
        assert jnp.allclose(oxt, rxt, atol=1e-5), f"sobel_x mismatch for {shape}"
        assert jnp.allclose(oyt, ryt, atol=1e-5), f"sobel_y mismatch for {shape}"

    print("KERNEL_OK")
</pallas_src>

<mosaic_0001>
module attributes {stable_mosaic.version = 11 : i64} {
  func.func @_sobel_small_kernel(%arg0: i32, %arg1: memref<32x16xf32, #tpu.memory_space<vmem>>, %arg2: memref<32x1xi32, #tpu.memory_space<vmem>>, %arg3: memref<32x16xf32, #tpu.memory_space<vmem>>, %arg4: memref<32x16xf32, #tpu.memory_space<vmem>>) attributes {dimension_semantics = [#tpu.dimension_semantics<arbitrary>], iteration_bounds = array<i64: 1>, scalar_prefetch = 0 : i64, scratch_operands = 0 : i64, tpu.core_type = #tpu.core_type<tc>, window_params = [{pipeline_mode = #tpu.pipeline_mode<synchronous>, transform_indices = @transform_0, window_bounds = array<i64: 32, 16>}, {pipeline_mode = #tpu.pipeline_mode<synchronous>, transform_indices = @transform_1, window_bounds = array<i64: 32, 1>}, {pipeline_mode = #tpu.pipeline_mode<synchronous>, transform_indices = @transform_2, window_bounds = array<i64: 32, 16>}, {pipeline_mode = #tpu.pipeline_mode<synchronous>, transform_indices = @transform_3, window_bounds = array<i64: 32, 16>}]} {
    %c0 = arith.constant 0 : index
    %c0_0 = arith.constant 0 : index
    %0 = vector.load %arg1[%c0, %c0_0] : memref<32x16xf32, #tpu.memory_space<vmem>>, vector<32x16xf32>
    %c0_1 = arith.constant 0 : index
    %c0_2 = arith.constant 0 : index
    %1 = vector.load %arg2[%c0_1, %c0_2] : memref<32x1xi32, #tpu.memory_space<vmem>>, vector<32x1xi32>
    %c0_i32 = arith.constant 0 : i32
    %2 = vector.broadcast %c0_i32 : i32 to vector<32x1xi32>
    %3 = arith.cmpi eq, %1, %2 : vector<32x1xi32>
    %c1_i32 = arith.constant 1 : i32
    %4 = tpu.dynamic_rotate %0 by %c1_i32 dim 0 : vector<32x16xf32>, i32 -> vector<32x16xf32>
    %cst = arith.constant 0.000000e+00 : f32
    %5 = vector.shape_cast %3 : vector<32x1xi1> to vector<32x1xi1>
    %6 = vector.broadcast %5 : vector<32x1xi1> to vector<32x16xi1>
    %7 = vector.broadcast %cst : f32 to vector<32x16xf32>
    %8 = arith.select %6, %7, %4 : vector<32x16xi1>, vector<32x16xf32>
    %c15_i32 = arith.constant 15 : i32
    %9 = vector.broadcast %c15_i32 : i32 to vector<32x1xi32>
    %10 = arith.cmpi eq, %1, %9 : vector<32x1xi32>
    %c31_i32 = arith.constant 31 : i32
    %11 = tpu.dynamic_rotate %0 by %c31_i32 dim 0 : vector<32x16xf32>, i32 -> vector<32x16xf32>
    %cst_3 = arith.constant 0.000000e+00 : f32
    %12 = vector.shape_cast %10 : vector<32x1xi1> to vector<32x1xi1>
    %13 = vector.broadcast %12 : vector<32x1xi1> to vector<32x16xi1>
    %14 = vector.broadcast %cst_3 : f32 to vector<32x16xf32>
    %15 = arith.select %13, %14, %11 : vector<32x16xi1>, vector<32x16xf32>
    %cst_4 = arith.constant 2.000000e+00 : f32
    %16 = vector.broadcast %cst_4 : f32 to vector<32x16xf32>
    %17 = arith.mulf %16, %0 : vector<32x16xf32>
    %18 = arith.addf %8, %17 : vector<32x16xf32>
    %19 = arith.addf %18, %15 : vector<32x16xf32>
    %20 = arith.subf %8, %15 : vector<32x16xf32>
    %21 = tpu.iota {dimensions = array<i32: 1>} : vector<1x16xi32>
    %c0_i32_5 = arith.constant 0 : i32
    %22 = vector.broadcast %c0_i32_5 : i32 to vector<1x16xi32>
    %23 = arith.cmpi eq, %21, %22 : vector<1x16xi32>
    %c15_i32_6 = arith.constant 15 : i32
    %24 = vector.broadcast %c15_i32_6 : i32 to vector<1x16xi32>
    %25 = arith.cmpi eq, %21, %24 : vector<1x16xi32>
    %c1_i32_7 = arith.constant 1 : i32
    %26 = tpu.dynamic_rotate %19 by %c1_i32_7 dim 1 : vector<32x16xf32>, i32 -> vector<32x16xf32>
    %cst_8 = arith.constant 0.000000e+00 : f32
    %27 = vector.shape_cast %23 : vector<1x16xi1> to vector<1x16xi1>
    %28 = vector.broadcast %27 : vector<1x16xi1> to vector<32x16xi1>
    %29 = vector.broadcast %cst_8 : f32 to vector<32x16xf32>
    %30 = arith.select %28, %29, %26 : vector<32x16xi1>, vector<32x16xf32>
    %c15_i32_9 = arith.constant 15 : i32
    %31 = tpu.dynamic_rotate %19 by %c15_i32_9 dim 1 : vector<32x16xf32>, i32 -> vector<32x16xf32>
    %cst_10 = arith.constant 0.000000e+00 : f32
    %32 = vector.shape_cast %25 : vector<1x16xi1> to vector<1x16xi1>
    %33 = vector.broadcast %32 : vector<1x16xi1> to vector<32x16xi1>
    %34 = vector.broadcast %cst_10 : f32 to vector<32x16xf32>
    %35 = arith.select %33, %34, %31 : vector<32x16xi1>, vector<32x16xf32>
    %c1_i32_11 = arith.constant 1 : i32
    %36 = tpu.dynamic_rotate %20 by %c1_i32_11 dim 1 : vector<32x16xf32>, i32 -> vector<32x16xf32>
    %cst_12 = arith.constant 0.000000e+00 : f32
    %37 = vector.shape_cast %23 : vector<1x16xi1> to vector<1x16xi1>
    %38 = vector.broadcast %37 : vector<1x16xi1> to vector<32x16xi1>
    %39 = vector.broadcast %cst_12 : f32 to vector<32x16xf32>
    %40 = arith.select %38, %39, %36 : vector<32x16xi1>, vector<32x16xf32>
    %c15_i32_13 = arith.constant 15 : i32
    %41 = tpu.dynamic_rotate %20 by %c15_i32_13 dim 1 : vector<32x16xf32>, i32 -> vector<32x16xf32>
    %cst_14 = arith.constant 0.000000e+00 : f32
    %42 = vector.shape_cast %25 : vector<1x16xi1> to vector<1x16xi1>
    %43 = vector.broadcast %42 : vector<1x16xi1> to vector<32x16xi1>
    %44 = vector.broadcast %cst_14 : f32 to vector<32x16xf32>
    %45 = arith.select %43, %44, %41 : vector<32x16xi1>, vector<32x16xf32>
    %46 = arith.subf %35, %30 : vector<32x16xf32>
    %47 = math.absf %46 : vector<32x16xf32>
    %c0_15 = arith.constant 0 : index
    %c0_16 = arith.constant 0 : index
    %48 = vector.load %arg3[%c0_15, %c0_16] : memref<32x16xf32, #tpu.memory_space<vmem>>, vector<32x16xf32>
    tpu.vector_store %arg3[%c0_15, %c0_16], %47 {strides = array<i32>} : memref<32x16xf32, #tpu.memory_space<vmem>>, vector<32x16xf32>,
    %cst_17 = arith.constant 2.000000e+00 : f32
    %49 = vector.broadcast %cst_17 : f32 to vector<32x16xf32>
    %50 = arith.mulf %49, %20 : vector<32x16xf32>
    %51 = arith.addf %40, %50 : vector<32x16xf32>
    %52 = arith.addf %51, %45 : vector<32x16xf32>
    %53 = math.absf %52 : vector<32x16xf32>
    %c0_18 = arith.constant 0 : index
    %c0_19 = arith.constant 0 : index
    %54 = vector.load %arg4[%c0_18, %c0_19] : memref<32x16xf32, #tpu.memory_space<vmem>>, vector<32x16xf32>
    tpu.vector_store %arg4[%c0_18, %c0_19], %53 {strides = array<i32>} : memref<32x16xf32, #tpu.memory_space<vmem>>, vector<32x16xf32>,
    return
  }
  func.func @transform_0(%arg0: i32) -> (i32, i32) {
    %c0_i32 = arith.constant 0 : i32
    %c0_i32_0 = arith.constant 0 : i32
    %c0_i32_1 = arith.constant 0 : i32
    return %c0_i32, %c0_i32_0 : i32, i32
  }
  func.func @transform_1(%arg0: i32) -> (i32, i32) {
    %c0_i32 = arith.constant 0 : i32
    %c0_i32_0 = arith.constant 0 : i32
    %c0_i32_1 = arith.constant 0 : i32
    return %c0_i32, %c0_i32_0 : i32, i32
  }
  func.func @transform_2(%arg0: i32) -> (i32, i32) {
    %c0_i32 = arith.constant 0 : i32
    %c0_i32_0 = arith.constant 0 : i32
    %c0_i32_1 = arith.constant 0 : i32
    return %c0_i32, %c0_i32_0 : i32, i32
  }
  func.func @transform_3(%arg0: i32) -> (i32, i32) {
    %c0_i32 = arith.constant 0 : i32
    %c0_i32_0 = arith.constant 0 : i32
    %c0_i32_1 = arith.constant 0 : i32
    return %c0_i32, %c0_i32_0 : i32, i32
  }
}

</mosaic_0001>

<bundles_post_ra>
// kernel: tpu_custom_call.1
= control target key start
LH: loop header
LB: loop body
LE: loop exit
PB: predicated region body
PF: predicated region fallthrough
CT: control target
= control target key end

     0   :  { %v289_v0 = vmov 0   ;;  %v29_v13 = vlaneseq  ;;  %s291_s27 = smov 113   ;;  %s292_s28 = smov 127   ;;  %s447_s1 = inlined_call_operand.vmem [shape: s32[32,1], index: 1, kind: input, shape index: {}]   ;;  %s448_s0 = inlined_call_operand.vmem [shape: f32[32,16], index: 0, kind: input, shape index: {}]   ;;  %s449_s3 = inlined_call_operand.vmem [shape: f32[32,16], index: 3, kind: output, shape index: {1}]   ;;  %s450_s2 = inlined_call_operand.vmem [shape: f32[32,16], index: 2, kind: output, shape index: {0}]  }
   0x1   :  { %288 = vset.pattern.permute.xlu1 %v289_v0  ;;  %287 = vset.pattern.permute.xlu0 %v289_v0  ;;  %v19_v1 = vld [vmem:[%s447_s1 + $0x10] sm:$0xff]  ;;  %v17_v2 = vld [vmem:[%s447_s1] sm:$0xff]  ;;  %v20_v3 = vld [vmem:[%s447_s1 + $0x18] sm:$0xff] }
   0x2   :  { %vm23_vm0 = vcmp.eq.s32.totalorder %v19_v1, 0  ;;  %vm21_vm1 = vcmp.eq.s32.totalorder %v17_v2, 0  ;;  %vm24_vm2 = vcmp.eq.s32.totalorder %v20_v3, 0  ;;  %v18_v4 = vld [vmem:[%s447_s1 + $0x8] sm:$0xff]  ;;  %vm60_vm5 = vcmp.eq.s32.totalorder %v17_v2, 15  ;;  %v13_v15 = vld [vmem:[%s448_s0] sm:$0xff] }
   0x3   :  { %v38_v5 = vsel %vm23_vm0, 1, %v289_v0  ;;  %v36_v6 = vsel %vm21_vm1, 1, %v289_v0  ;;  %vm22_vm3 = vcmp.eq.s32.totalorder %v18_v4, 0  ;;  %v39_v7 = vsel %vm24_vm2, 1, %v289_v0  ;;  %v16_v16 = vld [vmem:[%s448_s0 + $0x18] sm:$0xff]  ;;  %v14_v19 = vld [vmem:[%s448_s0 + $0x8] sm:$0xff] }
   0x4   :  { %47 = vperm.xlu1 %288, %v38_v5   ;;  %41 = vperm.xlu0 %287, %v36_v6   ;;  %v37_v8 = vsel %vm22_vm3, 1, %v289_v0  ;;  %vm61_vm4 = vcmp.eq.s32.totalorder %v18_v4, 15  ;;  %v73_v10 = vsel %vm60_vm5, 1, %v289_v0  ;;  %vm63_vm6 = vcmp.eq.s32.totalorder %v20_v3, 15  ;;  %v15_v20 = vld [vmem:[%s448_s0 + $0x10] sm:$0xff]  ;;  %s290_s0 = smov 16  }
   0x5   :  { %v74_v9 = vsel %vm61_vm4, 1, %v289_v0  ;;  %vm62_vm7 = vcmp.eq.s32.totalorder %v19_v1, 15  ;;  %v76_v11 = vsel %vm63_vm6, 1, %v289_v0  ;;  %v30_v14 = vshrl.u32 %v29_v13, 7 }
   0x6   :  { %v75_v12 = vsel %vm62_vm7, 1, %v289_v0  ;;  %v25_v21 = vrot.slane %v13_v15, 7  ;;  %v28_v22 = vrot.slane %v16_v16, 7  ;;  %v65_v23 = vrot.slane %v14_v19, 1 }
   0x7   :  { %vm31_vm8 = vcmp.lt.s32.totalorder %v30_v14, 1  ;;  %v66_v24 = vrot.slane %v15_v20, 1  ;;  %v64_v25 = vrot.slane %v13_v15, 1  ;;  %v26_v26 = vrot.slane %v14_v19, 7 }
   0x8   :  { %50 = vperm.xlu1 %288, %v39_v7   ;;  %44 = vperm.xlu0 %287, %v37_v8   ;;  %v27_v27 = vrot.slane %v15_v20, 7  ;;  %vm68_vm9 = vcmp.lt.s32.totalorder %v30_v14, 7  ;;  %v67_v30 = vrot.slane %v16_v16, 1  ;;  %v35_v31 = vsel %vm31_vm8, %v28_v22, %v25_v21 }
   0x9   :  { %v34_v32 = vsel %vm31_vm8, %v25_v21, %v26_v26  ;;  %v70_v33 = vsel %vm68_vm9, %v65_v23, %v66_v24  ;;  %v71_v34 = vsel %vm68_vm9, %v64_v25, %v65_v23  ;;  %v97_v49 = vmul.f32 2.0, %v13_v15 }
   0xa   :  { %v33_v35 = vsel %vm31_vm8, %v26_v26, %v27_v27  ;;  %v32_v36 = vsel %vm31_vm8, %v27_v27, %v28_v22  ;;  %v72_v39 = vsel %vm68_vm9, %v67_v30, %v64_v25  ;;  %v69_v40 = vsel %vm68_vm9, %v66_v24, %v67_v30 }
   0xb   :  { %v98_v50 = vmul.f32 2.0, %v14_v19  ;;  %v99_v57 = vmul.f32 2.0, %v15_v20  ;;  %v100_v59 = vmul.f32 2.0, %v16_v16  ;;  %vm117_vm2 = vcmask 1047680  }
   0xc   :  { %81 = vperm.xlu1 %288, %v74_v9   ;;  %78 = vperm.xlu0 %287, %v73_v10   ;;  %vm250_vm5 = vcmask 130048  }
  0x10   :  { %87 = vperm.xlu1 %288, %v76_v11   ;;  %84 = vperm.xlu0 %287, %v75_v12  }
  0x83   :  { %v48_v17 = vpop.permute.xlu1 %47  ;;  %v42_v18 = vpop.permute.xlu0 %41 }
  0x84   :  { %vm52_vm10 = vcmp.eq.s32.totalorder %v42_v18, 1  ;;  %vm54_vm14 = vcmp.eq.s32.totalorder %v48_v17, 1 }
  0x85   :  { %v56_v41 = vsel %vm52_vm10, 0.0, %v35_v31  ;;  %v58_v51 = vsel %vm54_vm14, 0.0, %v33_v35 }
  0x86   :  { %v101_v58 = vadd.f32 %v97_v49, %v56_v41  ;;  %v103_v63 = vadd.f32 %v99_v57, %v58_v51 }
  0x87   :  { %v51_v28 = vpop.permute.xlu1 %50  ;;  %v45_v29 = vpop.permute.xlu0 %44 }
  0x88   :  { %vm53_vm11 = vcmp.eq.s32.totalorder %v45_v29, 1  ;;  %vm55_vm15 = vcmp.eq.s32.totalorder %v51_v28, 1 }
  0x89   :  { %v57_v42 = vsel %vm53_vm11, 0.0, %v34_v32  ;;  %v59_v52 = vsel %vm55_vm15, 0.0, %v32_v36  ;;  %v114_v36 = vand.u32 127, %v29_v13 }
  0x8a   :  { %v102_v60 = vadd.f32 %v98_v50, %v57_v42  ;;  %v104_v0 = vadd.f32 %v100_v59, %v59_v52 }
  0x8b   :  { %v82_v37 = vpop.permute.xlu1 %81  ;;  %v79_v38 = vpop.permute.xlu0 %78  ;;  %vm115_vm3 = vcmp.eq.s32.totalorder %v114_v36, 0  ;;  %vm116_vm4 = vcmp.eq.s32.totalorder %v114_v36, 15 }
  0x8c   :  { %vm90_vm12 = vcmp.eq.s32.totalorder %v82_v37, 1  ;;  %vm89_vm13 = vcmp.eq.s32.totalorder %v79_v38, 1 }
  0x8d   :  { %v94_v43 = vsel %vm90_vm12, 0.0, %v70_v33  ;;  %v93_v44 = vsel %vm89_vm13, 0.0, %v71_v34 }
  0x8e   :  { %v342_v45 = vsub.f32 %v57_v42, %v94_v43  ;;  %v344_v46 = vsub.f32 %v56_v41, %v93_v44  ;;  %v106_v61 = vadd.f32 %v102_v60, %v94_v43  ;;  %v105_v62 = vadd.f32 %v101_v58, %v93_v44 }
  0x8f   :  { %v88_v47 = vpop.permute.xlu1 %87  ;;  %v85_v48 = vpop.permute.xlu0 %84 }
  0x90   :  { %vm92_vm0 = vcmp.eq.s32.totalorder %v88_v47, 1  ;;  %vm91_vm1 = vcmp.eq.s32.totalorder %v85_v48, 1  ;;  %182 = vrot.lane.b32.xlu0 %v344_v46, %s290_s0  ;;  %185 = vrot.lane.b32.xlu1 %v342_v45, %s290_s0  ;;  %v255_v43 = vmul.f32 2.0, %v344_v46  ;;  %v256_v44 = vmul.f32 2.0, %v342_v45 }
  0x91   :  { %v96_v53 = vsel %vm92_vm0, 0.0, %v72_v39  ;;  %v95_v54 = vsel %vm91_vm1, 0.0, %v69_v40 }
  0x92   :  { %v350_v55 = vsub.f32 %v59_v52, %v96_v53  ;;  %v352_v56 = vsub.f32 %v58_v51, %v95_v54  ;;  %v108_v1 = vadd.f32 %v104_v0, %v96_v53  ;;  %v107_v2 = vadd.f32 %v103_v63, %v95_v54 }
  0x94   :  { %188 = vrot.lane.b32.xlu0 %v352_v56, %s290_s0  ;;  %191 = vrot.lane.b32.xlu1 %v350_v55, %s290_s0 }
  0x98   :  { %118 = vrot.lane.b32.xlu0 %v105_v62, %s290_s0  ;;  %121 = vrot.lane.b32.xlu1 %v106_v61, %s290_s0 }
  0x9c   :  { %124 = vrot.lane.b32.xlu0 %v107_v2, %s290_s0  ;;  %127 = vrot.lane.b32.xlu1 %v108_v1, %s290_s0 }
 0x102   :  { %v183_v3 = vpop.permute.xlu0 %182  ;;  %v186_v4 = vpop.permute.xlu1 %185 }
 0x103   :  { %v184_v5 = vsel %vm117_vm2, %v183_v3, %v344_v46  ;;  %v187_v6 = vsel %vm117_vm2, %v186_v4, %v342_v45 }
 0x104   :  { %194 = vrot.lane.b32.xlu0 %v184_v5, %s290_s0  ;;  %196 = vrot.lane.b32.xlu1 %v187_v6, %s290_s0 }
 0x106   :  { %v189_v7 = vpop.permute.xlu0 %188  ;;  %v192_v8 = vpop.permute.xlu1 %191 }
 0x107   :  { %v190_v9 = vsel %vm117_vm2, %v189_v7, %v352_v56  ;;  %v193_v10 = vsel %vm117_vm2, %v192_v8, %v350_v55 }
 0x108   :  { %198 = vrot.lane.b32.xlu0 %v190_v9, %s290_s0  ;;  %200 = vrot.lane.b32.xlu1 %v193_v10, %s290_s0 }
 0x10a   :  { %v119_v11 = vpop.permute.xlu0 %118  ;;  %v122_v12 = vpop.permute.xlu1 %121 }
 0x10b   :  { %v120_v14 = vsel %vm117_vm2, %v119_v11, %v105_v62  ;;  %v123_v15 = vsel %vm117_vm2, %v122_v12, %v106_v61 }
 0x10c   :  { %130 = vrot.lane.b32.xlu0 %v120_v14, %s290_s0  ;;  %132 = vrot.lane.b32.xlu1 %v123_v15, %s290_s0  ;;  %v257_v15 = vmul.f32 2.0, %v352_v56 }
 0x10e   :  { %v125_v16 = vpop.permute.xlu0 %124  ;;  %v128_v17 = vpop.permute.xlu1 %127 }
 0x10f   :  { %v126_v18 = vsel %vm117_vm2, %v125_v16, %v107_v2  ;;  %v129_v19 = vsel %vm117_vm2, %v128_v17, %v108_v1  ;;  %v258_v16 = vmul.f32 2.0, %v350_v55 }
 0x110   :  { %134 = vrot.lane.b32.xlu0 %v126_v18, %s290_s0  ;;  %136 = vrot.lane.b32.xlu1 %v129_v19, %s290_s0 }
 0x176   :  { %v195_v20 = vpop.permute.xlu0 %194  ;;  %v197_v21 = vpop.permute.xlu1 %196 }
 0x177   :  { %v202_v22 = vsel %vm117_vm2, %v195_v20, %v344_v46  ;;  %v203_v23 = vsel %vm117_vm2, %v197_v21, %v342_v45 }
 0x178   :  { %210 = vrot.lane.b32.xlu0 %v202_v22, %s291_s27  ;;  %212 = vrot.lane.b32.xlu1 %v203_v23, %s291_s27 }
 0x17a   :  { %v199_v24 = vpop.permute.xlu0 %198  ;;  %v201_v25 = vpop.permute.xlu1 %200 }
 0x17b   :  { %v204_v26 = vsel %vm117_vm2, %v199_v24, %v352_v56  ;;  %v205_v27 = vsel %vm117_vm2, %v201_v25, %v350_v55 }
 0x17c   :  { %214 = vrot.lane.b32.xlu0 %v204_v26, %s291_s27  ;;  %216 = vrot.lane.b32.xlu1 %v205_v27, %s291_s27 }
 0x17e   :  { %v131_v28 = vpop.permute.xlu0 %130  ;;  %v133_v29 = vpop.permute.xlu1 %132 }
 0x17f   :  { %v138_v30 = vsel %vm117_vm2, %v131_v28, %v105_v62  ;;  %v139_v31 = vsel %vm117_vm2, %v133_v29, %v106_v61 }
 0x180   :  { %226 = vrot.lane.b32.xlu0 %v202_v22, %s292_s28  ;;  %228 = vrot.lane.b32.xlu1 %v203_v23, %s292_s28 }
 0x182   :  { %v135_v32 = vpop.permute.xlu0 %134  ;;  %v137_v33 = vpop.permute.xlu1 %136 }
 0x183   :  { %v140_v34 = vsel %vm117_vm2, %v135_v32, %v107_v2  ;;  %v141_v35 = vsel %vm117_vm2, %v137_v33, %v108_v1 }
 0x184   :  { %148 = vrot.lane.b32.xlu0 %v138_v30, %s291_s27  ;;  %150 = vrot.lane.b32.xlu1 %v139_v31, %s291_s27 }
 0x188   :  { %152 = vrot.lane.b32.xlu0 %v140_v34, %s291_s27  ;;  %154 = vrot.lane.b32.xlu1 %v141_v35, %s291_s27 }
 0x18c   :  { %166 = vrot.lane.b32.xlu0 %v138_v30, %s292_s28  ;;  %168 = vrot.lane.b32.xlu1 %v139_v31, %s292_s28 }
 0x190   :  { %170 = vrot.lane.b32.xlu0 %v140_v34, %s292_s28  ;;  %172 = vrot.lane.b32.xlu1 %v141_v35, %s292_s28 }
 0x194   :  { %230 = vrot.lane.b32.xlu0 %v204_v26, %s292_s28  ;;  %232 = vrot.lane.b32.xlu1 %v205_v27, %s292_s28 }
 0x1ea   :  { %v211_v37 = vpop.permute.xlu0 %210  ;;  %v213_v38 = vpop.permute.xlu1 %212 }
 0x1eb   :  { %v222_v41 = vsel %vm115_vm3, 0.0, %v211_v37  ;;  %v223_v42 = vsel %vm115_vm3, 0.0, %v213_v38 }
 0x1ec   :  { %v259_v47 = vadd.f32 %v255_v43, %v222_v41  ;;  %v260_v48 = vadd.f32 %v256_v44, %v223_v42 }
 0x1ee   :  { %v215_v39 = vpop.permute.xlu0 %214  ;;  %v217_v40 = vpop.permute.xlu1 %216 }
 0x1ef   :  { %v224_v4 = vsel %vm115_vm3, 0.0, %v215_v39  ;;  %v225_v5 = vsel %vm115_vm3, 0.0, %v217_v40 }
 0x1f0   :  { %v261_v19 = vadd.f32 %v257_v15, %v224_v4  ;;  %v262_v20 = vadd.f32 %v258_v16, %v225_v5 }
 0x1f2   :  { %v227_v49 = vpop.permute.xlu0 %226  ;;  %v229_v50 = vpop.permute.xlu1 %228 }
 0x1f3   :  { %v238_v13 = vsel %vm116_vm4, 0.0, %v227_v49  ;;  %v239_v51 = vsel %vm116_vm4, 0.0, %v229_v50 }
 0x1f4   :  { %v263_v52 = vadd.f32 %v259_v47, %v238_v13  ;;  %v264_v53 = vadd.f32 %v260_v48, %v239_v51 }
 0x1f6   :  { %v267_v54 = vand.u32 2147483647, %v263_v52  ;;  %v268_v57 = vand.u32 2147483647, %v264_v53  ;;  %v149_v58 = vpop.permute.xlu0 %148  ;;  %v151_v59 = vpop.permute.xlu1 %150 }
 0x1f7   :  { %v160_v62 = vsel %vm115_vm3, 0.0, %v149_v58  ;;  %v161_v63 = vsel %vm115_vm3, 0.0, %v151_v59 }
 0x1f8   :  { %271 = vst.msk [vmem:[%s449_s3] sm:$0xff] %vm250_vm5, %v267_v54  ;;  %272 = vst.msk [vmem:[%s449_s3 + $0x8] sm:$0xff] %vm250_vm5, %v268_v57 }
 0x1fa   :  { %v153_v45 = vpop.permute.xlu0 %152  ;;  %v155_v46 = vpop.permute.xlu1 %154 }
 0x1fb   :  { %v162_v10 = vsel %vm115_vm3, 0.0, %v153_v45  ;;  %v163_v11 = vsel %vm115_vm3, 0.0, %v155_v46 }
 0x1fe   :  { %v167_v60 = vpop.permute.xlu0 %166  ;;  %v169_v61 = vpop.permute.xlu1 %168 }
 0x1ff   :  { %v178_v0 = vsel %vm116_vm4, 0.0, %v167_v60  ;;  %v179_v1 = vsel %vm116_vm4, 0.0, %v169_v61 }
 0x200   :  { %v242_v2 = vsub.f32 %v178_v0, %v160_v62  ;;  %v243_v3 = vsub.f32 %v179_v1, %v161_v63 }
 0x202   :  { %v246_v6 = vand.u32 2147483647, %v242_v2  ;;  %v247_v7 = vand.u32 2147483647, %v243_v3  ;;  %v171_v8 = vpop.permute.xlu0 %170  ;;  %v173_v9 = vpop.permute.xlu1 %172 }
 0x203   :  { %v180_v12 = vsel %vm116_vm4, 0.0, %v171_v8  ;;  %v181_v14 = vsel %vm116_vm4, 0.0, %v173_v9 }
 0x204   :  { %251 = vst.msk [vmem:[%s450_s2] sm:$0xff] %vm250_vm5, %v246_v6  ;;  %252 = vst.msk [vmem:[%s450_s2 + $0x8] sm:$0xff] %vm250_vm5, %v247_v7  ;;  %v244_v17 = vsub.f32 %v180_v12, %v162_v10  ;;  %v245_v18 = vsub.f32 %v181_v14, %v163_v11 }
 0x206   :  { %v248_v21 = vand.u32 2147483647, %v244_v17  ;;  %v249_v22 = vand.u32 2147483647, %v245_v18  ;;  %v231_v23 = vpop.permute.xlu0 %230  ;;  %v233_v56 = vpop.permute.xlu1 %232 }
 0x207   :  { %v240_v55 = vsel %vm116_vm4, 0.0, %v231_v23  ;;  %v241_v24 = vsel %vm116_vm4, 0.0, %v233_v56 }
 0x208   :  { %253 = vst.msk [vmem:[%s450_s2 + $0x10] sm:$0xff] %vm250_vm5, %v248_v21  ;;  %254 = vst.msk [vmem:[%s450_s2 + $0x18] sm:$0xff] %vm250_vm5, %v249_v22  ;;  %v265_v25 = vadd.f32 %v261_v19, %v240_v55  ;;  %v266_v26 = vadd.f32 %v262_v20, %v241_v24 }
 0x20a   :  { %v269_v27 = vand.u32 2147483647, %v265_v25  ;;  %v270_v28 = vand.u32 2147483647, %v266_v26 }
 0x20c   :  { %273 = vst.msk [vmem:[%s449_s3 + $0x10] sm:$0xff] %vm250_vm5, %v269_v27  ;;  %274 = vst.msk [vmem:[%s449_s3 + $0x18] sm:$0xff] %vm250_vm5, %v270_v28 }

</bundles_post_ra>
